<compile_context>
chip_gen: v7x
topology: tpu7x:2x2x1
jax: 0.10.0
libtpu: 0.0.40
codegen_flags: <defaults>
</compile_context>

<pallas_src>
import functools

import jax
import jax.numpy as jnp
from jax import lax
from jax.experimental import pallas as pl
from jax.experimental.pallas import tpu as pltpu


_OUT_PAD = 128          # lane-dense padded width for the 10-class logits
_NEG_BIG = -1.0e30      # bias for padded lanes -> exp() underflows to exactly 0


def _round_up(x, m):
    return ((x + m - 1) // m) * m


def _sigmoid1(x):
    # sigmoid(x) == 0.5 * tanh(0.5 * x) + 0.5  -> single EUP transcendental
    # (vs exp + reciprocal), exact in f32 to ~1 ulp of the two-op form.
    return 0.5 * jnp.tanh(0.5 * x) + 0.5


# ----------------------------- fused kernel -------------------------------- #

def _fused_mlp_kernel(n_layer,
                      x_ref, w1_ref, b1_ref, wx_ref, bx_ref, w2_ref, b2_ref,
                      o_ref):
    tb = x_ref.shape[0]
    hp = w1_ref.shape[1]

    # Hoist the (1,H)->(tb,H) bias broadcasts out of the layer loop: JAX does
    # not CSE broadcast_in_dim, so inside the (unrolled) loop each layer would
    # re-materialize the sublane broadcast on the VPU.
    b1_b = jnp.broadcast_to(b1_ref[...], (tb, hp))
    bx_b = jnp.broadcast_to(bx_ref[...], (tb, hp))

    # ---- fc1 + sigmoid (MXU matmul, EUP tanh) ------------------------------
    h = jnp.dot(x_ref[...], w1_ref[...], preferred_element_type=jnp.float32)
    h = _sigmoid1(h + b1_b)

    # ---- (n_layer - 1) shared fcX layers, activation stays on-chip ----------
    def body(_, h):
        y = jnp.dot(h.astype(wx_ref.dtype), wx_ref[...],
                    preferred_element_type=jnp.float32)
        return _sigmoid1(y + bx_b)

    n_hidden = n_layer - 1
    if n_hidden > 0:
        unroll = n_hidden if n_hidden <= 8 else 4   # partial unroll when deep
        h = lax.fori_loop(0, n_hidden, body, h, unroll=unroll)

    # ---- fc2 + log_softmax over the lane-padded (128-wide) head -------------
    logits = jnp.dot(h.astype(w2_ref.dtype), w2_ref[...],
                     preferred_element_type=jnp.float32)
    logits = logits + b2_ref[...]                 # padded lanes sit at ~-1e30
    m = jnp.max(logits, axis=1, keepdims=True)
    z = logits - m
    lse = jnp.log(jnp.sum(jnp.exp(z), axis=1, keepdims=True))
    o_ref[...] = z - lse


# ----------------------------- wrapper -------------------------------------- #

def _pick_batch_tile(B):
    """Batch tile: big tiles to amortize per-step overhead, padding waste < 128
    rows, and >= 2 grid steps whenever B > 128 so the parallel axis spans both
    v7x TensorCores."""
    if B <= 128:
        return _round_up(max(B, 8), 8)
    for tb in (512, 256, 128):
        pb = _round_up(B, tb)
        if pb - B < 128 and pb // tb >= 2:
            return tb
    return 128


def nlayer_sigmoid_forward(image, params, n_layer, *, matmul_dtype=jnp.float32):
    """Forward pass matching NLayerSigmoidModel.forward.

    image: (B, 1, 28, 28) NCHW (or any (B, ...) with prod(...) == 784).
    Returns (B, 10) log-probabilities.
    matmul_dtype=jnp.bfloat16 enables the full-rate MXU path on v6e/v7x
    (loosens f32 parity); default f32 keeps exact parity with the reference.
    """
    (w1, b1), (wx, bx), (w2, b2) = params
    B = image.shape[0]
    x = image.reshape(B, -1).astype(jnp.float32)      # .view(B, -1)
    K = x.shape[1]
    H = w1.shape[1]
    n_cls = w2.shape[1]

    # Pad hidden width to a lane multiple. Zero-padded weight rows/cols keep
    # the math exact: padded activations (sigmoid(0)=0.5) multiply zero rows
    # and never contribute to real outputs.
    Hp = _round_up(H, 128)
    if Hp != H:
        w1 = jnp.pad(w1, ((0, 0), (0, Hp - H)))
        b1 = jnp.pad(b1, (0, Hp - H))
        wx = jnp.pad(wx, ((0, Hp - H), (0, Hp - H)))
        bx = jnp.pad(bx, (0, Hp - H))
        w2 = jnp.pad(w2, ((0, Hp - H), (0, 0)))

    # Batch tiling / padding.
    tb = _pick_batch_tile(B)
    pb = _round_up(B, tb)
    if pb != B:
        x = jnp.pad(x, ((0, pb - B), (0, 0)))

    # Lane-pad the 10-wide head to 128 lanes; -1e30 bias on padded lanes keeps
    # the log-softmax over the real classes exact, and stores are dense vst.
    w2p = jnp.zeros((Hp, _OUT_PAD), jnp.float32).at[:, :n_cls].set(w2)
    b2p = jnp.full((1, _OUT_PAD), _NEG_BIG, jnp.float32).at[0, :n_cls].set(b2)
    b1r = b1.reshape(1, Hp).astype(jnp.float32)
    bxr = bx.reshape(1, Hp).astype(jnp.float32)

    # Matmul operand dtype (f32 default; bf16 optional on v6e/v7x).
    xk = x.astype(matmul_dtype)
    w1k = w1.astype(matmul_dtype)
    wxk = wx.astype(matmul_dtype)
    w2k = w2p.astype(matmul_dtype)

    # Explicit VMEM budget: double-buffered x/out tiles, resident weights
    # (counted double-buffered to stay conservative), plus activation scratch.
    Kp = _round_up(K, 128)
    isz = jnp.dtype(matmul_dtype).itemsize
    weight_bytes = (Kp * Hp + Hp * Hp + Hp * _OUT_PAD) * isz \
        + (2 * Hp + _OUT_PAD) * 4
    io_bytes = 2 * tb * Kp * isz + 2 * tb * _OUT_PAD * 4
    scratch_bytes = 2 * tb * Hp * 4
    vmem_bytes = min(
        int(1.25 * (2 * weight_bytes + io_bytes + scratch_bytes)) + (2 << 20),
        64 << 20)

    flops = 2 * pb * (K * Hp + (n_layer - 1) * Hp * Hp + Hp * _OUT_PAD)
    transcendentals = pb * (Hp * n_layer + _OUT_PAD)
    bytes_accessed = (pb * K + pb * _OUT_PAD) * 4 + weight_bytes

    out = pl.pallas_call(
        functools.partial(_fused_mlp_kernel, n_layer),
        out_shape=jax.ShapeDtypeStruct((pb, _OUT_PAD), jnp.float32),
        grid=(pb // tb,),
        in_specs=[
            pl.BlockSpec((tb, K), lambda i: (i, 0)),          # x: batch-tiled
            pl.BlockSpec((K, Hp), lambda i: (0, 0)),          # w1 resident
            pl.BlockSpec((1, Hp), lambda i: (0, 0)),          # b1 resident
            pl.BlockSpec((Hp, Hp), lambda i: (0, 0)),         # wx resident
            pl.BlockSpec((1, Hp), lambda i: (0, 0)),          # bx resident
            pl.BlockSpec((Hp, _OUT_PAD), lambda i: (0, 0)),   # w2 (padded) resident
            pl.BlockSpec((1, _OUT_PAD), lambda i: (0, 0)),    # b2 (padded) resident
        ],
        out_specs=pl.BlockSpec((tb, _OUT_PAD), lambda i: (i, 0)),
        compiler_params=pltpu.CompilerParams(
            dimension_semantics=("parallel",),                # megacore on v7x
            vmem_limit_bytes=vmem_bytes),
        cost_estimate=pl.CostEstimate(
            flops=int(flops),
            transcendentals=int(transcendentals),
            bytes_accessed=int(bytes_accessed)),
    )(xk, w1k, b1r, wxk, bxr, w2k, b2p)

    return out[:B, :n_cls]


# ----------------------------- params --------------------------------------- #

def init_params(key, n_neurones):
    """Deterministic init matching PyTorch nn.Linear shapes.

    PyTorch stores weight as (out, in); we pre-transpose to (in, out) so the
    kernel does x @ W directly.
    """
    ks = jax.random.split(key, 6)

    def _linear(kw, kb, fan_in, fan_out):
        bound = 1.0 / jnp.sqrt(fan_in)
        w = jax.random.uniform(kw, (fan_in, fan_out), jnp.float32, -bound, bound)
        b = jax.random.uniform(kb, (fan_out,), jnp.float32, -bound, bound)
        return w, b

    fc1 = _linear(ks[0], ks[1], 28 * 28, n_neurones)
    fcX = _linear(ks[2], ks[3], n_neurones, n_neurones)
    fc2 = _linear(ks[4], ks[5], n_neurones, 10)
    return fc1, fcX, fc2


# ----------------------------- reference / main ------------------------------ #

def _reference(image, params, n_layer):
    (w1, b1), (wx, bx), (w2, b2) = params
    x = image.reshape(image.shape[0], -1).astype(jnp.float32)
    x = jax.nn.sigmoid(x @ w1 + b1)
    for _ in range(n_layer - 1):
        x = jax.nn.sigmoid(x @ wx + bx)
    y = x @ w2 + b2
    return jax.nn.log_softmax(y, axis=1)


if __name__ == "__main__":
    key = jax.random.PRNGKey(0)
    k_img, k_par, k_img2, k_par2 = jax.random.split(key, 4)

    # Main config (lane-aligned hidden width).
    N_NEURONES = 128
    N_LAYER = 3
    BATCH = 8

    image = jax.random.normal(k_img, (BATCH, 1, 28, 28), dtype=jnp.float32)
    params = init_params(k_par, N_NEURONES)

    out = jax.block_until_ready(nlayer_sigmoid_forward(image, params, N_LAYER))
    ref = _reference(image, params, N_LAYER)
    assert out.shape == (BATCH, 10)
    assert jnp.allclose(out, ref, atol=1e-4, rtol=1e-4), "mismatch vs JAX reference"
    assert jnp.allclose(jnp.exp(out).sum(axis=1), 1.0, atol=1e-4)

    # Exercise the hidden-width padding (H=96 -> 128) and odd-batch padding path.
    image2 = jax.random.normal(k_img2, (5, 1, 28, 28), dtype=jnp.float32)
    params2 = init_params(k_par2, 96)
    out2 = jax.block_until_ready(nlayer_sigmoid_forward(image2, params2, 4))
    ref2 = _reference(image2, params2, 4)
    assert out2.shape == (5, 10)
    assert jnp.allclose(out2, ref2, atol=1e-4, rtol=1e-4), "mismatch (padded-H path)"

    print("KERNEL_OK")
</pallas_src>

<mosaic_0001>
module attributes {stable_mosaic.version = 11 : i64} {
  func.func @_fused_mlp_kernel(%arg0: i32, %arg1: memref<8x784xf32, #tpu.memory_space<vmem>>, %arg2: memref<784x128xf32, #tpu.memory_space<vmem>>, %arg3: memref<1x128xf32, #tpu.memory_space<vmem>>, %arg4: memref<128x128xf32, #tpu.memory_space<vmem>>, %arg5: memref<1x128xf32, #tpu.memory_space<vmem>>, %arg6: memref<128x128xf32, #tpu.memory_space<vmem>>, %arg7: memref<1x128xf32, #tpu.memory_space<vmem>>, %arg8: memref<8x128xf32, #tpu.memory_space<vmem>>) attributes {dimension_semantics = [#tpu.dimension_semantics<parallel>], iteration_bounds = array<i64: 1>, scalar_prefetch = 0 : i64, scratch_operands = 0 : i64, tpu.core_type = #tpu.core_type<tc>, window_params = [{transform_indices = @transform_0, window_bounds = array<i64: 8, 784>}, {pipeline_mode = #tpu.pipeline_mode<synchronous>, transform_indices = @transform_1, window_bounds = array<i64: 784, 128>}, {pipeline_mode = #tpu.pipeline_mode<synchronous>, transform_indices = @transform_2, window_bounds = array<i64: 1, 128>}, {pipeline_mode = #tpu.pipeline_mode<synchronous>, transform_indices = @transform_3, window_bounds = array<i64: 128, 128>}, {pipeline_mode = #tpu.pipeline_mode<synchronous>, transform_indices = @transform_4, window_bounds = array<i64: 1, 128>}, {pipeline_mode = #tpu.pipeline_mode<synchronous>, transform_indices = @transform_5, window_bounds = array<i64: 128, 128>}, {pipeline_mode = #tpu.pipeline_mode<synchronous>, transform_indices = @transform_6, window_bounds = array<i64: 1, 128>}, {transform_indices = @transform_7, window_bounds = array<i64: 8, 128>}]} {
    %c0 = arith.constant 0 : index
    %c0_0 = arith.constant 0 : index
    %0 = vector.load %arg3[%c0, %c0_0] : memref<1x128xf32, #tpu.memory_space<vmem>>, vector<1x128xf32>
    %1 = vector.shape_cast %0 : vector<1x128xf32> to vector<1x128xf32>
    %2 = vector.broadcast %1 : vector<1x128xf32> to vector<8x128xf32>
    %c0_1 = arith.constant 0 : index
    %c0_2 = arith.constant 0 : index
    %3 = vector.load %arg5[%c0_1, %c0_2] : memref<1x128xf32, #tpu.memory_space<vmem>>, vector<1x128xf32>
    %4 = vector.shape_cast %3 : vector<1x128xf32> to vector<1x128xf32>
    %5 = vector.broadcast %4 : vector<1x128xf32> to vector<8x128xf32>
    %c0_3 = arith.constant 0 : index
    %c0_4 = arith.constant 0 : index
    %6 = vector.load %arg1[%c0_3, %c0_4] : memref<8x784xf32, #tpu.memory_space<vmem>>, vector<8x784xf32>
    %c0_5 = arith.constant 0 : index
    %c0_6 = arith.constant 0 : index
    %7 = vector.load %arg2[%c0_5, %c0_6] : memref<784x128xf32, #tpu.memory_space<vmem>>, vector<784x128xf32>
    %cst = arith.constant dense<0.000000e+00> : vector<8x128xf32>
    %8 = tpu.matmul %6, %7, %cst {dimension_numbers = #tpu.dot_dimension_numbers<[1], [0], [0], [1], [0, 0, 1, 1], [], []>} : vector<8x784xf32>, vector<784x128xf32>, vector<8x128xf32> -> vector<8x128xf32>
    %9 = arith.addf %8, %2 : vector<8x128xf32>
    %cst_7 = arith.constant 5.000000e-01 : f32
    %10 = vector.broadcast %cst_7 : f32 to vector<8x128xf32>
    %11 = arith.mulf %10, %9 : vector<8x128xf32>
    %12 = math.tanh %11 : vector<8x128xf32>
    %cst_8 = arith.constant 5.000000e-01 : f32
    %13 = vector.broadcast %cst_8 : f32 to vector<8x128xf32>
    %14 = arith.mulf %13, %12 : vector<8x128xf32>
    %cst_9 = arith.constant 5.000000e-01 : f32
    %15 = vector.broadcast %cst_9 : f32 to vector<8x128xf32>
    %16 = arith.addf %14, %15 : vector<8x128xf32>
    %c0_i32 = arith.constant 0 : i32
    %c0_10 = arith.constant 0 : index
    %c0_11 = arith.constant 0 : index
    %17 = vector.load %arg4[%c0_10, %c0_11] : memref<128x128xf32, #tpu.memory_space<vmem>>, vector<128x128xf32>
    %cst_12 = arith.constant dense<0.000000e+00> : vector<8x128xf32>
    %18 = tpu.matmul %16, %17, %cst_12 {dimension_numbers = #tpu.dot_dimension_numbers<[1], [0], [0], [1], [0, 0, 1, 1], [], []>} : vector<8x128xf32>, vector<128x128xf32>, vector<8x128xf32> -> vector<8x128xf32>
    %19 = arith.addf %18, %5 : vector<8x128xf32>
    %cst_13 = arith.constant 5.000000e-01 : f32
    %20 = vector.broadcast %cst_13 : f32 to vector<8x128xf32>
    %21 = arith.mulf %20, %19 : vector<8x128xf32>
    %22 = math.tanh %21 : vector<8x128xf32>
    %cst_14 = arith.constant 5.000000e-01 : f32
    %23 = vector.broadcast %cst_14 : f32 to vector<8x128xf32>
    %24 = arith.mulf %23, %22 : vector<8x128xf32>
    %cst_15 = arith.constant 5.000000e-01 : f32
    %25 = vector.broadcast %cst_15 : f32 to vector<8x128xf32>
    %26 = arith.addf %24, %25 : vector<8x128xf32>
    %c1_i32 = arith.constant 1 : i32
    %c0_16 = arith.constant 0 : index
    %c0_17 = arith.constant 0 : index
    %27 = vector.load %arg4[%c0_16, %c0_17] : memref<128x128xf32, #tpu.memory_space<vmem>>, vector<128x128xf32>
    %cst_18 = arith.constant dense<0.000000e+00> : vector<8x128xf32>
    %28 = tpu.matmul %26, %27, %cst_18 {dimension_numbers = #tpu.dot_dimension_numbers<[1], [0], [0], [1], [0, 0, 1, 1], [], []>} : vector<8x128xf32>, vector<128x128xf32>, vector<8x128xf32> -> vector<8x128xf32>
    %29 = arith.addf %28, %5 : vector<8x128xf32>
    %cst_19 = arith.constant 5.000000e-01 : f32
    %30 = vector.broadcast %cst_19 : f32 to vector<8x128xf32>
    %31 = arith.mulf %30, %29 : vector<8x128xf32>
    %32 = math.tanh %31 : vector<8x128xf32>
    %cst_20 = arith.constant 5.000000e-01 : f32
    %33 = vector.broadcast %cst_20 : f32 to vector<8x128xf32>
    %34 = arith.mulf %33, %32 : vector<8x128xf32>
    %cst_21 = arith.constant 5.000000e-01 : f32
    %35 = vector.broadcast %cst_21 : f32 to vector<8x128xf32>
    %36 = arith.addf %34, %35 : vector<8x128xf32>
    %c0_22 = arith.constant 0 : index
    %c0_23 = arith.constant 0 : index
    %37 = vector.load %arg6[%c0_22, %c0_23] : memref<128x128xf32, #tpu.memory_space<vmem>>, vector<128x128xf32>
    %cst_24 = arith.constant dense<0.000000e+00> : vector<8x128xf32>
    %38 = tpu.matmul %36, %37, %cst_24 {dimension_numbers = #tpu.dot_dimension_numbers<[1], [0], [0], [1], [0, 0, 1, 1], [], []>} : vector<8x128xf32>, vector<128x128xf32>, vector<8x128xf32> -> vector<8x128xf32>
    %c0_25 = arith.constant 0 : index
    %c0_26 = arith.constant 0 : index
    %39 = vector.load %arg7[%c0_25, %c0_26] : memref<1x128xf32, #tpu.memory_space<vmem>>, vector<1x128xf32>
    %40 = vector.broadcast %39 : vector<1x128xf32> to vector<8x128xf32>
    %41 = arith.addf %38, %40 : vector<8x128xf32>
    %cst_27 = arith.constant dense<0xFF800000> : vector<8xf32>
    %42 = vector.multi_reduction <maximumf>, %41, %cst_27 [1] : vector<8x128xf32> to vector<8xf32>
    %43 = vector.shape_cast %42 : vector<8xf32> to vector<8x1xf32>
    %44 = vector.broadcast %43 : vector<8x1xf32> to vector<8x128xf32>
    %45 = arith.subf %41, %44 : vector<8x128xf32>
    %46 = math.exp %45 : vector<8x128xf32>
    %cst_28 = arith.constant dense<0.000000e+00> : vector<8xf32>
    %47 = vector.multi_reduction <add>, %46, %cst_28 [1] : vector<8x128xf32> to vector<8xf32>
    %48 = vector.shape_cast %47 : vector<8xf32> to vector<8x1xf32>
    %49 = math.log %48 : vector<8x1xf32>
    %50 = vector.broadcast %49 : vector<8x1xf32> to vector<8x128xf32>
    %51 = arith.subf %45, %50 : vector<8x128xf32>
    %c0_29 = arith.constant 0 : index
    %c0_30 = arith.constant 0 : index
    %52 = vector.load %arg8[%c0_29, %c0_30] : memref<8x128xf32, #tpu.memory_space<vmem>>, vector<8x128xf32>
    tpu.vector_store %arg8[%c0_29, %c0_30], %51 {strides = array<i32>} : memref<8x128xf32, #tpu.memory_space<vmem>>, vector<8x128xf32>,
    return
  }
  func.func @transform_0(%arg0: i32) -> (i32, i32) {
    %c0_i32 = arith.constant 0 : i32
    %c0_i32_0 = arith.constant 0 : i32
    return %arg0, %c0_i32 : i32, i32
  }
  func.func @transform_1(%arg0: i32) -> (i32, i32) {
    %c0_i32 = arith.constant 0 : i32
    %c0_i32_0 = arith.constant 0 : i32
    %c0_i32_1 = arith.constant 0 : i32
    return %c0_i32, %c0_i32_0 : i32, i32
  }
  func.func @transform_2(%arg0: i32) -> (i32, i32) {
    %c0_i32 = arith.constant 0 : i32
    %c0_i32_0 = arith.constant 0 : i32
    %c0_i32_1 = arith.constant 0 : i32
    return %c0_i32, %c0_i32_0 : i32, i32
  }
  func.func @transform_3(%arg0: i32) -> (i32, i32) {
    %c0_i32 = arith.constant 0 : i32
    %c0_i32_0 = arith.constant 0 : i32
    %c0_i32_1 = arith.constant 0 : i32
    return %c0_i32, %c0_i32_0 : i32, i32
  }
  func.func @transform_4(%arg0: i32) -> (i32, i32) {
    %c0_i32 = arith.constant 0 : i32
    %c0_i32_0 = arith.constant 0 : i32
    %c0_i32_1 = arith.constant 0 : i32
    return %c0_i32, %c0_i32_0 : i32, i32
  }
  func.func @transform_5(%arg0: i32) -> (i32, i32) {
    %c0_i32 = arith.constant 0 : i32
    %c0_i32_0 = arith.constant 0 : i32
    %c0_i32_1 = arith.constant 0 : i32
    return %c0_i32, %c0_i32_0 : i32, i32
  }
  func.func @transform_6(%arg0: i32) -> (i32, i32) {
    %c0_i32 = arith.constant 0 : i32
    %c0_i32_0 = arith.constant 0 : i32
    %c0_i32_1 = arith.constant 0 : i32
    return %c0_i32, %c0_i32_0 : i32, i32
  }
  func.func @transform_7(%arg0: i32) -> (i32, i32) {
    %c0_i32 = arith.constant 0 : i32
    %c0_i32_0 = arith.constant 0 : i32
    return %arg0, %c0_i32 : i32, i32
  }
}

</mosaic_0001>

<bundles_post_ra>
// kernel: tpu_custom_call.1
= control target key start
LH: loop header
LB: loop body
LE: loop exit
PB: predicated region body
PF: predicated region fallthrough
CT: control target
= control target key end

     0   :  { %12 = vsyncpa [#allocation3], 0  ;;  %s1517_s0 = inlined_call_operand.hbm [shape: f32[8,784], index: 0, kind: input, shape index: {}]   ;;  %s1518_s1 = inlined_call_operand.hbm [shape: f32[784,128], index: 1, kind: input, shape index: {}]   ;;  %s1519_s2 = inlined_call_operand.vmem [shape: f32[1,128], index: 2, kind: input, shape index: {}]   ;;  %s1520_s3 = inlined_call_operand.hbm [shape: f32[128,128], index: 3, kind: input, shape index: {}]   ;;  %s1521_s4 = inlined_call_operand.vmem [shape: f32[1,128], index: 4, kind: input, shape index: {}]   ;;  %s1522_s5 = inlined_call_operand.hbm [shape: f32[128,128], index: 5, kind: input, shape index: {}]   ;;  %s1523_s6 = inlined_call_operand.vmem [shape: f32[1,128], index: 6, kind: input, shape index: {}]   ;;  %s1524_s7 = inlined_call_operand.hbm [shape: f32[8,128], index: 7, kind: output, shape index: {}]  }
   0x1   :  { %13 = vsyncpa [#allocation6], 0 }
   0x2   :  { %14 = vsyncpa [#allocation9], 0 }
   0x3   :  { %15 = vsyncpa [#allocation4], 0  ;;  %s1356_s24 = smov [#allocation5]   ;;  %s1238_s28 = scalar_lea.hbm %s1518_s1, 12544 }
   0x4   :  { %s31_s25 = sshll.u32 %s1356_s24, 4  ;;  %p1239_p0 = scmp.ne.s32.totalorder %s1518_s1, %s1238_s28  ;;  %s32_s25 = int_to_ptr.vmem [resolvable:$true] %s31_s25 }
   0x5   :  { %p1242_p1 = scmp.lt.u32.totalorder %s1238_s28, %s1518_s1 }
   0x7   :  { %p1244_p2 = pnand %p1242_p1, %p1239_p0 }
   0x9   :  { %1247 = shalt.err (!%p1244_p2)
}
   0xa   :  { %s1248_s10 = scalar_lea.vmem %s32_s25, 12544  ;;  %p1253_p4 = scmp.lt.s32.totalorder %s32_s25, %s32_s25 }
   0xb   :  { %p1249_p3 = scmp.ne.s32.totalorder %s32_s25, %s1248_s10  ;;  %p1254_p5 = scmp.lt.s32.totalorder %s1248_s10, %s1248_s10 }
   0xd   :  { %p1255_p6 = por %p1254_p5, %p1253_p4 }
   0xf   :  { %p1256_p7 = pnand %p1255_p6, %p1249_p3 }
  0x11   :  { %1259 = shalt.err (!%p1256_p7)
}
  0x12   :  { %s1357_s11 = smov 128   ;;  %s1358_s12 = smov 8  }
  0x13   :  { %37 = dma.hbm_to_vmem [thread:$0]  %s1518_s1, 12544, %s32_s25, [#allocation6], %s1357_s11, %s1357_s11, %s1358_s12  }
  0x14   :  { %s1359_s15 = smov [#allocation2]   ;;  %s1360_s17 = smov [#allocation7]  }
  0x15   :  { %s22_s16 = sshll.u32 %s1359_s15, 4  ;;  %s45_s18 = sshll.u32 %s1360_s17, 4  ;;  %s23_s16 = int_to_ptr.vmem [resolvable:$true] %s22_s16  ;;  %s46_s18 = int_to_ptr.vmem [resolvable:$true] %s45_s18 }
  0x16   :  { %s1260_s21 = scalar_lea.hbm %s1517_s0, 896 }
  0x17   :  { %p1261_p8 = scmp.ne.s32.totalorder %s1517_s0, %s1260_s21  ;;  %p1264_p9 = scmp.lt.u32.totalorder %s1260_s21, %s1517_s0 }
  0x19   :  { %p1266_p10 = pnand %p1264_p9, %p1261_p8 }
  0x1b   :  { %1269 = shalt.err (!%p1266_p10)
}
  0x1c   :  { %s1270_s1 = scalar_lea.vmem %s23_s16, 896  ;;  %p1275_p12 = scmp.lt.s32.totalorder %s23_s16, %s23_s16 }
  0x1d   :  { %p1271_p11 = scmp.ne.s32.totalorder %s23_s16, %s1270_s1  ;;  %p1276_p13 = scmp.lt.s32.totalorder %s1270_s1, %s1270_s1 }
  0x1f   :  { %p1277_p0 = por %p1276_p13, %p1275_p12 }
  0x21   :  { %p1278_p1 = pnand %p1277_p0, %p1271_p11 }
  0x23   :  { %1281 = shalt.err (!%p1278_p1)
}
  0x24   :  { %25 = dma.hbm_to_vmem [thread:$0]  %s1517_s0, 896, %s23_s16, [#allocation3]  }
  0x25   :  { %s1282_s30 = scalar_lea.hbm %s1520_s3, 2048 }
  0x26   :  { %p1283_p2 = scmp.ne.s32.totalorder %s1520_s3, %s1282_s30  ;;  %p1286_p3 = scmp.lt.u32.totalorder %s1282_s30, %s1520_s3 }
  0x28   :  { %p1288_p4 = pnand %p1286_p3, %p1283_p2 }
  0x2a   :  { %1291 = shalt.err (!%p1288_p4)
}
  0x2b   :  { %s1292_s14 = scalar_lea.vmem %s46_s18, 2048  ;;  %p1297_p6 = scmp.lt.s32.totalorder %s46_s18, %s46_s18 }
  0x2c   :  { %p1293_p5 = scmp.ne.s32.totalorder %s46_s18, %s1292_s14  ;;  %p1298_p7 = scmp.lt.s32.totalorder %s1292_s14, %s1292_s14 }
  0x2e   :  { %p1299_p8 = por %p1298_p7, %p1297_p6 }
  0x30   :  { %p1300_p9 = pnand %p1299_p8, %p1293_p5 }
  0x32   :  { %1303 = shalt.err (!%p1300_p9)
}
  0x33   :  { %51 = dma.hbm_to_vmem [thread:$0]  %s1520_s3, 2048, %s46_s18, [#allocation6], %s1357_s11, %s1357_s11, %s1358_s12  }
  0x34   :  { %s1361_s16 = smov [#allocation8]   ;;  %s1304_s21 = scalar_lea.hbm %s1522_s5, 2048 }
  0x35   :  { %s59_s17 = sshll.u32 %s1361_s16, 4  ;;  %p1305_p10 = scmp.ne.s32.totalorder %s1522_s5, %s1304_s21  ;;  %s60_s17 = int_to_ptr.vmem [resolvable:$true] %s59_s17 }
  0x36   :  { %p1308_p11 = scmp.lt.u32.totalorder %s1304_s21, %s1522_s5 }
  0x38   :  { %p1310_p12 = pnand %p1308_p11, %p1305_p10 }
  0x3a   :  { %1313 = shalt.err (!%p1310_p12)
}
  0x3b   :  { %s1314_s1 = scalar_lea.vmem %s60_s17, 2048  ;;  %p1319_p0 = scmp.lt.s32.totalorder %s60_s17, %s60_s17 }
  0x3c   :  { %p1315_p13 = scmp.ne.s32.totalorder %s60_s17, %s1314_s1  ;;  %p1320_p1 = scmp.lt.s32.totalorder %s1314_s1, %s1314_s1 }
  0x3e   :  { %p1321_p2 = por %p1320_p1, %p1319_p0 }
  0x40   :  { %p1322_p3 = pnand %p1321_p2, %p1315_p13 }
  0x42   :  { %1325 = shalt.err (!%p1322_p3)
}
  0x43   :  { %65 = dma.hbm_to_vmem [thread:$0]  %s1522_s5, 2048, %s60_s17, [#allocation9], %s1357_s11, %s1357_s11, %s1358_s12  }
  0x44   :  { %1348 = dma.done.wait [#allocation3], 896  }
  0x45   :  { %1349 = vsyncadd [#allocation3], 4294966400 }
  0x46   :  { %1350 = dma.done.wait [#allocation6], 14592  }
  0x47   :  { %1351 = vsyncadd [#allocation6], 4294952704 }
  0x48   :  { %1352 = dma.done.wait [#allocation9], 2048  }
  0x49   :  { %1353 = vsyncadd [#allocation9], 4294965248  ;;  %v117_v0 = vld [vmem:[#allocation5 + $0x80] sm:$0xff]  ;;  %v118_v1 = vld [vmem:[#allocation5 + $0x88] sm:$0xff]  ;;  %vm1363_vm0 = vmmov 0   ;;  %vm199_vm1 = vcmask 130048  }
  0x4a   :  { %v101_v2 = vld [vmem:[#allocation5] sm:$0xff]  ;;  %v1047_v3 = vpack.c.bf16 %v118_v1, %v117_v0  ;;  %v102_v4 = vld [vmem:[#allocation5 + $0x8] sm:$0xff]  ;;  %v119_v11 = vld [vmem:[#allocation5 + $0x90] sm:$0xff]  ;;  %s1365_s27 = smov [#allocation10]  }
  0x4b   :  { %v149_v5 = vld [vmem:[#allocation5 + $0x180] sm:$0xff]  ;;  %v150_v6 = vld [vmem:[#allocation5 + $0x188] sm:$0xff]  ;;  %v1049_v7 = vpack.c.bf16 %v102_v4, %v101_v2  ;;  %v120_v13 = vld [vmem:[#allocation5 + $0x98] sm:$0xff]  ;;  %s761_s28 = sshll.u32 %s1365_s27, 4  ;;  %s762_s28 = int_to_ptr.vmem [resolvable:$true] %s761_s28 }
  0x4c   :  { %v1079_v8 = vpack.c.bf16 %v150_v6, %v149_v5  ;;  %v133_v9 = vld [vmem:[#allocation5 + $0x100] sm:$0xff]  ;;  %v134_v10 = vld [vmem:[#allocation5 + $0x108] sm:$0xff]  ;;  %1048 = vmatprep.subr.bf16.mxu0 %v1047_v3  ;;  %v103_v14 = vld [vmem:[#allocation5 + $0x10] sm:$0xff]  ;;  %v1051_v16 = vpack.c.bf16 %v120_v13, %v119_v11  ;;  %p1331_p5 = scmp.lt.s32.totalorder %s762_s28, %s762_s28 }
  0x4d   :  { %v1081_v12 = vpack.c.bf16 %v134_v10, %v133_v9  ;;  %v104_v15 = vld [vmem:[#allocation5 + $0x18] sm:$0xff]  ;;  %1050 = vmatpush3.bf16.msra.mxu0 %v1049_v7  ;;  %v151_v18 = vld [vmem:[#allocation5 + $0x190] sm:$0xff]  ;;  %v121_v23 = vld [vmem:[#allocation5 + $0xa0] sm:$0xff] }
  0x4e   :  { %1080 = vmatprep.subr.bf16.mxu1 %v1079_v8  ;;  %v1053_v17 = vpack.c.bf16 %v104_v15, %v103_v14  ;;  %v152_v19 = vld [vmem:[#allocation5 + $0x198] sm:$0xff]  ;;  %v135_v20 = vld [vmem:[#allocation5 + $0x110] sm:$0xff]  ;;  %v122_v24 = vld [vmem:[#allocation5 + $0xa8] sm:$0xff]  ;;  %1052 = vmatprep.subr.bf16.mxu0 %v1051_v16 }
  0x4f   :  { %1082 = vmatpush3.bf16.msra.mxu1 %v1081_v12  ;;  %v1083_v21 = vpack.c.bf16 %v152_v19, %v151_v18  ;;  %v136_v22 = vld [vmem:[#allocation5 + $0x118] sm:$0xff]  ;;  %v1055_v26 = vpack.c.bf16 %v122_v24, %v121_v23  ;;  %v105_v27 = vld [vmem:[#allocation5 + $0x20] sm:$0xff]  ;;  %v106_v28 = vld [vmem:[#allocation5 + $0x28] sm:$0xff] }
  0x50   :  { %v1085_v25 = vpack.c.bf16 %v136_v22, %v135_v20  ;;  %v153_v29 = vld [vmem:[#allocation5 + $0x1a0] sm:$0xff]  ;;  %v154_v30 = vld [vmem:[#allocation5 + $0x1a8] sm:$0xff]  ;;  %v1057_v33 = vpack.c.bf16 %v106_v28, %v105_v27  ;;  %v123_v35 = vld [vmem:[#allocation5 + $0xb0] sm:$0xff] }
  0x51   :  { %1084 = vmatprep.subr.bf16.mxu1 %v1083_v21  ;;  %v137_v31 = vld [vmem:[#allocation5 + $0x120] sm:$0xff]  ;;  %v138_v32 = vld [vmem:[#allocation5 + $0x128] sm:$0xff]  ;;  %1054 = vmatpush3.bf16.msra.mxu0 %v1053_v17  ;;  %v1087_v34 = vpack.c.bf16 %v154_v30, %v153_v29  ;;  %v124_v36 = vld [vmem:[#allocation5 + $0xb8] sm:$0xff] }
  0x52   :  { %v107_v37 = vld [vmem:[#allocation5 + $0x30] sm:$0xff]  ;;  %1056 = vmatprep.subr.bf16.mxu0 %v1055_v26  ;;  %v1089_v38 = vpack.c.bf16 %v138_v32, %v137_v31  ;;  %v1059_v39 = vpack.c.bf16 %v124_v36, %v123_v35  ;;  %v108_v40 = vld [vmem:[#allocation5 + $0x38] sm:$0xff]  ;;  %v125_v46 = vld [vmem:[#allocation5 + $0xc0] sm:$0xff] }
  0x53   :  { %1086 = vmatpush3.bf16.msra.mxu1 %v1085_v25  ;;  %v155_v41 = vld [vmem:[#allocation5 + $0x1b0] sm:$0xff]  ;;  %v156_v42 = vld [vmem:[#allocation5 + $0x1b8] sm:$0xff]  ;;  %v126_v47 = vld [vmem:[#allocation5 + $0xc8] sm:$0xff]  ;;  %v1061_v48 = vpack.c.bf16 %v108_v40, %v107_v37 }
  0x54   :  { %1088 = vmatprep.subr.bf16.mxu1 %v1087_v34  ;;  %v1091_v43 = vpack.c.bf16 %v156_v42, %v155_v41  ;;  %v139_v44 = vld [vmem:[#allocation5 + $0x130] sm:$0xff]  ;;  %v140_v45 = vld [vmem:[#allocation5 + $0x138] sm:$0xff]  ;;  %v157_v49 = vld [vmem:[#allocation5 + $0x1c0] sm:$0xff]  ;;  %v1063_v52 = vpack.c.bf16 %v126_v47, %v125_v46 }
  0x55   :  { %1058 = vmatpush3.bf16.msra.mxu0 %v1057_v33  ;;  %v158_v50 = vld [vmem:[#allocation5 + $0x1c8] sm:$0xff]  ;;  %v1093_v51 = vpack.c.bf16 %v140_v45, %v139_v44  ;;  %v109_v53 = vld [vmem:[#allocation5 + $0x40] sm:$0xff]  ;;  %v127_v58 = vld [vmem:[#allocation5 + $0xd0] sm:$0xff] }
  0x56   :  { %1060 = vmatprep.subr.bf16.mxu0 %v1059_v39  ;;  %v110_v54 = vld [vmem:[#allocation5 + $0x48] sm:$0xff]  ;;  %v141_v55 = vld [vmem:[#allocation5 + $0x140] sm:$0xff]  ;;  %v1095_v56 = vpack.c.bf16 %v158_v50, %v157_v49  ;;  %v128_v59 = vld [vmem:[#allocation5 + $0xd8] sm:$0xff]  ;;  %v1362_v50 = vmov 0.0|0.0  }
  0x57   :  { %1090 = vmatpush3.bf16.msra.mxu1 %v1089_v38  ;;  %v142_v57 = vld [vmem:[#allocation5 + $0x148] sm:$0xff]  ;;  %v159_v60 = vld [vmem:[#allocation5 + $0x1d0] sm:$0xff]  ;;  %v160_v61 = vld [vmem:[#allocation5 + $0x1d8] sm:$0xff]  ;;  %v1065_v62 = vpack.c.bf16 %v110_v54, %v109_v53  ;;  %v1067_v0 = vpack.c.bf16 %v128_v59, %v127_v58 }
  0x58   :  { %1092 = vmatprep.subr.bf16.mxu1 %v1091_v43  ;;  %v1097_v63 = vpack.c.bf16 %v142_v57, %v141_v55  ;;  %v111_v1 = vld [vmem:[#allocation5 + $0x50] sm:$0xff]  ;;  %v112_v2 = vld [vmem:[#allocation5 + $0x58] sm:$0xff]  ;;  %v1099_v4 = vpack.c.bf16 %v160_v61, %v159_v60  ;;  %v129_v6 = vld [vmem:[#allocation5 + $0xe0] sm:$0xff]  ;;  %v1364_v60 = vmov 0.0  }
  0x59   :  { %1062 = vmatpush3.bf16.msra.mxu0 %v1061_v48  ;;  %v143_v3 = vld [vmem:[#allocation5 + $0x150] sm:$0xff]  ;;  %v144_v5 = vld [vmem:[#allocation5 + $0x158] sm:$0xff]  ;;  %v130_v7 = vld [vmem:[#allocation5 + $0xe8] sm:$0xff]  ;;  %v1069_v10 = vpack.c.bf16 %v112_v2, %v111_v1 }
  0x5a   :  { %1064 = vmatprep.subr.bf16.mxu0 %v1063_v52  ;;  %v161_v8 = vld [vmem:[#allocation5 + $0x1e0] sm:$0xff]  ;;  %v162_v9 = vld [vmem:[#allocation5 + $0x1e8] sm:$0xff]  ;;  %v95_v12 = vld [vmem:[#allocation2 + $0x8] sm:$0xff]  ;;  %v1101_v13 = vpack.c.bf16 %v144_v5, %v143_v3  ;;  %v1071_v14 = vpack.c.bf16 %v130_v7, %v129_v6 }
  0x5b   :  { %1094 = vmatpush3.bf16.msra.mxu1 %v1093_v51  ;;  %v113_v11 = vld [vmem:[#allocation5 + $0x60] sm:$0xff]  ;;  %v114_v15 = vld [vmem:[#allocation5 + $0x68] sm:$0xff]  ;;  %v1103_v18 = vpack.c.bf16 %v162_v9, %v161_v8  ;;  %v131_v19 = vld [vmem:[#allocation5 + $0xf0] sm:$0xff]  ;;  %267 = vmatprep.mubr.f32.mxu0 %v95_v12 }
  0x5c   :  { %1096 = vmatprep.subr.bf16.mxu1 %v1095_v56  ;;  %v145_v16 = vld [vmem:[#allocation5 + $0x160] sm:$0xff]  ;;  %v146_v17 = vld [vmem:[#allocation5 + $0x168] sm:$0xff]  ;;  %v132_v20 = vld [vmem:[#allocation5 + $0xf8] sm:$0xff]  ;;  %v1073_v24 = vpack.c.bf16 %v114_v15, %v113_v11 }
  0x5d   :  { %1066 = vmatpush3.bf16.msra.mxu0 %v1065_v62  ;;  %v97_v21 = vld [vmem:[#allocation2 + $0x18] sm:$0xff]  ;;  %v163_v22 = vld [vmem:[#allocation5 + $0x1f0] sm:$0xff]  ;;  %v164_v23 = vld [vmem:[#allocation5 + $0x1f8] sm:$0xff]  ;;  %v1105_v25 = vpack.c.bf16 %v146_v17, %v145_v16  ;;  %v1075_v26 = vpack.c.bf16 %v132_v20, %v131_v19 }
  0x5e   :  { %1068 = vmatprep.subr.bf16.mxu0 %v1067_v0  ;;  %337 = vmatprep.mubr.f32.mxu1 %v97_v21  ;;  %v115_v27 = vld [vmem:[#allocation5 + $0x70] sm:$0xff]  ;;  %v116_v28 = vld [vmem:[#allocation5 + $0x78] sm:$0xff]  ;;  %v1107_v30 = vpack.c.bf16 %v164_v23, %v163_v22  ;;  %v181_v32 = vld [vmem:[#allocation5 + $0x280] sm:$0xff] }
  0x5f   :  { %1098 = vmatpush3.bf16.msra.mxu1 %v1097_v63  ;;  %v147_v29 = vld [vmem:[#allocation5 + $0x170] sm:$0xff]  ;;  %v148_v31 = vld [vmem:[#allocation5 + $0x178] sm:$0xff]  ;;  %v182_v33 = vld [vmem:[#allocation5 + $0x288] sm:$0xff]  ;;  %v1077_v34 = vpack.c.bf16 %v116_v28, %v115_v27 }
  0x60   :  { %1100 = vmatprep.subr.bf16.mxu1 %v1099_v4  ;;  %v1109_v35 = vpack.c.bf16 %v148_v31, %v147_v29  ;;  %v1111_v36 = vpack.c.bf16 %v182_v33, %v181_v32  ;;  %v165_v37 = vld [vmem:[#allocation5 + $0x200] sm:$0xff]  ;;  %v166_v38 = vld [vmem:[#allocation5 + $0x208] sm:$0xff]  ;;  %v183_v39 = vld [vmem:[#allocation5 + $0x290] sm:$0xff] }
  0x61   :  { %1070 = vmatpush3.bf16.msra.mxu0 %v1069_v10  ;;  %v184_v40 = vld [vmem:[#allocation5 + $0x298] sm:$0xff]  ;;  %v94_v41 = vld [vmem:[#allocation2] sm:$0xff]  ;;  %v1113_v42 = vpack.c.bf16 %v166_v38, %v165_v37  ;;  %v167_v44 = vld [vmem:[#allocation5 + $0x210] sm:$0xff] }
  0x62   :  { %1072 = vmatprep.subr.bf16.mxu0 %v1071_v14  ;;  %v96_v43 = vld [vmem:[#allocation2 + $0x10] sm:$0xff]  ;;  %v1115_v45 = vpack.c.bf16 %v184_v40, %v183_v39  ;;  %v185_v47 = vld [vmem:[#allocation5 + $0x2a0] sm:$0xff]  ;;  %v186_v48 = vld [vmem:[#allocation5 + $0x2a8] sm:$0xff] }
  0x63   :  { %1102 = vmatpush3.bf16.msra.mxu1 %v1101_v13  ;;  %v168_v46 = vld [vmem:[#allocation5 + $0x218] sm:$0xff]  ;;  %v99_v49 = vld [vmem:[#allocation2 + $0x28] sm:$0xff]  ;;  %v197_v51 = vld [vmem:[#allocation5 + $0x300] sm:$0xff]  ;;  %v1119_v55 = vpack.c.bf16 %v186_v48, %v185_v47 }
  0x64   :  { %1104 = vmatprep.subr.bf16.mxu1 %v1103_v18  ;;  %v198_v52 = vld [vmem:[#allocation5 + $0x308] sm:$0xff]  ;;  %v1117_v54 = vpack.c.bf16 %v168_v46, %v167_v44  ;;  %v169_v56 = vld [vmem:[#allocation5 + $0x220] sm:$0xff]  ;;  %v187_v58 = vld [vmem:[#allocation5 + $0x2b0] sm:$0xff] }
  0x65   :  { %1074 = vmatpush3.bf16.msra.mxu0 %v1073_v24  ;;  %v1144_v53 = vpack.c.bf16 %v198_v52, %v197_v51  ;;  %v170_v57 = vld [vmem:[#allocation5 + $0x228] sm:$0xff]  ;;  %v188_v59 = vld [vmem:[#allocation5 + $0x2b8] sm:$0xff]  ;;  %v171_v0 = vld [vmem:[#allocation5 + $0x230] sm:$0xff] }
  0x66   :  { %1076 = vmatprep.subr.bf16.mxu0 %v1075_v26  ;;  %v100_v61 = vld [vmem:[#allocation2 + $0x30] sm:$0xff]  ;;  %v1121_v62 = vpack.c.bf16 %v170_v57, %v169_v56  ;;  %v1123_v63 = vpack.c.bf16 %v188_v59, %v187_v58  ;;  %v189_v2 = vld [vmem:[#allocation5 + $0x2c0] sm:$0xff]  ;;  %v190_v3 = vld [vmem:[#allocation5 + $0x2c8] sm:$0xff] }
  0x67   :  { %1106 = vmatpush3.bf16.msra.mxu1 %v1105_v25  ;;  %v172_v1 = vld [vmem:[#allocation5 + $0x238] sm:$0xff]  ;;  %v1127_v5 = vpack.c.bf16 %v190_v3, %v189_v2  ;;  %v173_v6 = vld [vmem:[#allocation5 + $0x240] sm:$0xff]  ;;  %v174_v7 = vld [vmem:[#allocation5 + $0x248] sm:$0xff] }
  0x68   :  { %1108 = vmatprep.subr.bf16.mxu1 %v1107_v30  ;;  %v1125_v4 = vpack.c.bf16 %v172_v1, %v171_v0  ;;  %v191_v8 = vld [vmem:[#allocation5 + $0x2d0] sm:$0xff]  ;;  %v192_v9 = vld [vmem:[#allocation5 + $0x2d8] sm:$0xff]  ;;  %v1129_v10 = vpack.c.bf16 %v174_v7, %v173_v6  ;;  %v193_v14 = vld [vmem:[#allocation5 + $0x2e0] sm:$0xff] }
  0x69   :  { %1078 = vmatpush3.bf16.msra.mxu0 %v1077_v34  ;;  %v1131_v11 = vpack.c.bf16 %v192_v9, %v191_v8  ;;  %v175_v12 = vld [vmem:[#allocation5 + $0x250] sm:$0xff]  ;;  %v176_v13 = vld [vmem:[#allocation5 + $0x258] sm:$0xff]  ;;  %v194_v15 = vld [vmem:[#allocation5 + $0x2e8] sm:$0xff] }
  0x6a   :  { %1112 = vmatprep.subr.bf16.mxu0 %v1111_v36  ;;  %v1133_v16 = vpack.c.bf16 %v176_v13, %v175_v12  ;;  %v1135_v17 = vpack.c.bf16 %v194_v15, %v193_v14  ;;  %v177_v18 = vld [vmem:[#allocation5 + $0x260] sm:$0xff]  ;;  %v178_v19 = vld [vmem:[#allocation5 + $0x268] sm:$0xff]  ;;  %v195_v20 = vld [vmem:[#allocation5 + $0x2f0] sm:$0xff] }
  0x6b   :  { %1110 = vmatpush3.bf16.msra.mxu1 %v1109_v35  ;;  %v196_v21 = vld [vmem:[#allocation5 + $0x2f8] sm:$0xff]  ;;  %v1137_v22 = vpack.c.bf16 %v178_v19, %v177_v18  ;;  %v179_v24 = vld [vmem:[#allocation5 + $0x270] sm:$0xff]  ;;  %v98_v27 = vld [vmem:[#allocation2 + $0x20] sm:$0xff] }
  0x6c   :  { %1143 = vmatprep.subr.bf16.mxu1 %v1362_v50  ;;  %268 = vmatmul.mubr.f32.vlgmr.msra.gmra.mrb[0].mxu0 %v94_v41  ;;  %v1139_v23 = vpack.c.bf16 %v196_v21, %v195_v20  ;;  %v180_v25 = vld [vmem:[#allocation5 + $0x278] sm:$0xff]  ;;  %v487_v28 = vld [vmem:[#allocation7] sm:$0xff]  ;;  %v489_v30 = vld [vmem:[#allocation7 + $0x10] sm:$0xff] }
  0x6d   :  { %1114 = vmatpush3.bf16.msra.mxu0 %v1113_v42  ;;  %407 = vmatprep.mubr.f32.mxu0 %v99_v49  ;;  %v1141_v26 = vpack.c.bf16 %v180_v25, %v179_v24  ;;  %v488_v29 = vld [vmem:[#allocation7 + $0x8] sm:$0xff]  ;;  %v490_v32 = vld [vmem:[#allocation7 + $0x18] sm:$0xff]  ;;  %v491_v34 = vld [vmem:[#allocation7 + $0x20] sm:$0xff] }
  0x6e   :  { %338 = vmatmul.mubr.f32.vlgmr.msra.gmra.mrb[0].mxu1 %v96_v43  ;;  %1116 = vmatprep.subr.bf16.mxu0 %v1115_v45  ;;  %v1147_v31 = vpack.c.bf16 %v488_v29, %v487_v28  ;;  %v1150_v33 = vpack.c.bf16 %v490_v32, %v489_v30  ;;  %v492_v35 = vld [vmem:[#allocation7 + $0x28] sm:$0xff]  ;;  %v493_v37 = vld [vmem:[#allocation7 + $0x30] sm:$0xff]  ;;  %v494_v38 = vld [vmem:[#allocation7 + $0x38] sm:$0xff] }
  0x6f   :  { %1145 = vmatpush3.bf16.msra.mxu1 %v1144_v53  ;;  %939 = vmatprep.mubr.msk.f32.mxu1 %vm1363_vm0, %v1364_v60  ;;  %v1153_v36 = vpack.c.bf16 %v492_v35, %v491_v34  ;;  %v1156_v39 = vpack.c.bf16 %v494_v38, %v493_v37  ;;  %v495_v40 = vld [vmem:[#allocation7 + $0x40] sm:$0xff]  ;;  %v496_v41 = vld [vmem:[#allocation7 + $0x48] sm:$0xff]  ;;  %v497_v43 = vld [vmem:[#allocation7 + $0x50] sm:$0xff] }
  0x70   :  { %1146 = vmatprep.subr.bf16.mxu1 %v1362_v50  ;;  %v1159_v42 = vpack.c.bf16 %v496_v41, %v495_v40  ;;  %v498_v44 = vld [vmem:[#allocation7 + $0x58] sm:$0xff]  ;;  %v499_v46 = vld [vmem:[#allocation7 + $0x60] sm:$0xff]  ;;  %v500_v47 = vld [vmem:[#allocation7 + $0x68] sm:$0xff] }
  0x71   :  { %1118 = vmatpush3.bf16.msra.mxu0 %v1117_v54  ;;  %v1162_v45 = vpack.c.bf16 %v498_v44, %v497_v43  ;;  %v1165_v48 = vpack.c.bf16 %v500_v47, %v499_v46  ;;  %v501_v49 = vld [vmem:[#allocation7 + $0x70] sm:$0xff]  ;;  %v502_v51 = vld [vmem:[#allocation7 + $0x78] sm:$0xff]  ;;  %v659_v29 = vld [vmem:[#allocation8 + $0x40] sm:$0xff] }
  0x72   :  { %1120 = vmatprep.subr.bf16.mxu0 %v1119_v55  ;;  %940 = vmatmul.mubr.msk.f32.vlgmr.msra.gmra.mrb[2].mxu1 %vm199_vm1, %v100_v61  ;;  %v1168_v52 = vpack.c.bf16 %v502_v51, %v501_v49  ;;  %v772_v54 = vld [vmem:[%s1519_s2] ss:$0 sm:$0xff]  ;;  %v653_v12 = vld [vmem:[#allocation8 + $0x10] sm:$0xff]  ;;  %v660_v30 = vld [vmem:[#allocation8 + $0x48] sm:$0xff] }
  0x73   :  { %974 = vmatprep.mubr.msk.f32.mxu1 %vm1363_vm0, %v1364_v60  ;;  %1148 = vmatpush3.bf16.msra.mxu1 %v1147_v31  ;;  %v654_v14 = vld [vmem:[#allocation8 + $0x18] sm:$0xff]  ;;  %v661_v32 = vld [vmem:[#allocation8 + $0x50] sm:$0xff]  ;;  %v663_v35 = vld [vmem:[#allocation8 + $0x60] sm:$0xff] }
  0x74   :  { %1149 = vmatprep.subr.bf16.mxu1 %v1362_v50  ;;  %v1198_v15 = vpack.c.bf16 %v654_v14, %v653_v12  ;;  %v665_v38 = vld [vmem:[#allocation8 + $0x70] sm:$0xff] }
  0x75   :  { %1122 = vmatpush3.bf16.msra.mxu0 %v1121_v62 }
  0x76   :  { %1124 = vmatprep.subr.bf16.mxu0 %v1123_v63 }
  0x77   :  { %1151 = vmatpush3.bf16.msra.mxu1 %v1150_v33 }
  0x78   :  { %1152 = vmatprep.subr.bf16.mxu1 %v1362_v50 }
  0x79   :  { %1126 = vmatpush3.bf16.msra.mxu0 %v1125_v4 }
  0x7a   :  { %1128 = vmatprep.subr.bf16.mxu0 %v1127_v5 }
  0x7b   :  { %1154 = vmatpush3.bf16.msra.mxu1 %v1153_v36 }
  0x7c   :  { %1155 = vmatprep.subr.bf16.mxu1 %v1362_v50 }
  0x7d   :  { %1130 = vmatpush3.bf16.msra.mxu0 %v1129_v10  ;;  %v651_v10 = vld [vmem:[#allocation8] sm:$0xff] }
  0x7e   :  { %1132 = vmatprep.subr.bf16.mxu0 %v1131_v11  ;;  %v652_v11 = vld [vmem:[#allocation8 + $0x8] sm:$0xff] }
  0x7f   :  { %1157 = vmatpush3.bf16.msra.mxu1 %v1156_v39  ;;  %v1195_v13 = vpack.c.bf16 %v652_v11, %v651_v10 }
  0x80   :  { %1158 = vmatprep.subr.bf16.mxu1 %v1362_v50 }
  0x81   :  { %1134 = vmatpush3.bf16.msra.mxu0 %v1133_v16  ;;  %v655_v16 = vld [vmem:[#allocation8 + $0x20] sm:$0xff] }
  0x82   :  { %1136 = vmatprep.subr.bf16.mxu0 %v1135_v17  ;;  %v656_v17 = vld [vmem:[#allocation8 + $0x28] sm:$0xff] }
  0x83   :  { %1160 = vmatpush3.bf16.msra.mxu1 %v1159_v42  ;;  %v1201_v18 = vpack.c.bf16 %v656_v17, %v655_v16 }
  0x84   :  { %1161 = vmatprep.subr.bf16.mxu1 %v1362_v50 }
  0x85   :  { %1138 = vmatpush3.bf16.msra.mxu0 %v1137_v22 }
  0x86   :  { %1140 = vmatprep.subr.bf16.mxu0 %v1139_v23 }
  0x87   :  { %1163 = vmatpush3.bf16.msra.mxu1 %v1162_v45 }
  0x88   :  { %1164 = vmatprep.subr.bf16.mxu1 %v1362_v50 }
  0x89   :  { %1142 = vmatpush3.bf16.msra.mxu0 %v1141_v26  ;;  %v657_v26 = vld [vmem:[#allocation8 + $0x30] sm:$0xff] }
  0x8a   :  { %1170 = vmatprep.subr.bf16.mxu0 %v1362_v50 }
  0x8b   :  { %1166 = vmatpush3.bf16.msra.mxu1 %v1165_v48 }
  0x8c   :  { %408 = vmatmul.mubr.f32.vlgmr.msra.gmra.mrb[2].mxu0 %v98_v27  ;;  %1167 = vmatprep.subr.bf16.mxu1 %v1362_v50  ;;  %v658_v27 = vld [vmem:[#allocation8 + $0x38] sm:$0xff] }
  0x8d   :  { %1009 = vmatprep.mubr.msk.f32.mxu0 %vm1363_vm0, %v1364_v60  ;;  %1172 = vmatpush3.bf16.msra.mxu0 %v1147_v31  ;;  %v1204_v28 = vpack.c.bf16 %v658_v27, %v657_v26  ;;  %v1207_v31 = vpack.c.bf16 %v660_v30, %v659_v29 }
  0x8e   :  { %1173 = vmatprep.subr.bf16.mxu0 %v1362_v50 }
  0x8f   :  { %1169 = vmatpush3.bf16.msra.mxu1 %v1168_v52 }
  0x90   :  { %1194 = vmatprep.subr.bf16.mxu1 %v1362_v50 }
  0x91   :  { %1175 = vmatpush3.bf16.msra.mxu0 %v1150_v33  ;;  %v662_v33 = vld [vmem:[#allocation8 + $0x58] sm:$0xff] }
  0x92   :  { %1176 = vmatprep.subr.bf16.mxu0 %v1362_v50  ;;  %v1210_v34 = vpack.c.bf16 %v662_v33, %v661_v32 }
  0x95   :  { %1178 = vmatpush3.bf16.msra.mxu0 %v1153_v36  ;;  %v664_v36 = vld [vmem:[#allocation8 + $0x68] sm:$0xff] }
  0x96   :  { %1179 = vmatprep.subr.bf16.mxu0 %v1362_v50  ;;  %v1213_v37 = vpack.c.bf16 %v664_v36, %v663_v35 }
  0x99   :  { %1181 = vmatpush3.bf16.msra.mxu0 %v1156_v39  ;;  %v666_v39 = vld [vmem:[#allocation8 + $0x78] sm:$0xff] }
  0x9a   :  { %1182 = vmatprep.subr.bf16.mxu0 %v1362_v50  ;;  %v1216_v40 = vpack.c.bf16 %v666_v39, %v665_v38 }
  0x9d   :  { %1184 = vmatpush3.bf16.msra.mxu0 %v1159_v42 }
  0x9e   :  { %1185 = vmatprep.subr.bf16.mxu0 %v1362_v50 }
  0xa1   :  { %1187 = vmatpush3.bf16.msra.mxu0 %v1162_v45 }
  0xa2   :  { %1188 = vmatprep.subr.bf16.mxu0 %v1362_v50 }
  0xa5   :  { %1190 = vmatpush3.bf16.msra.mxu0 %v1165_v48  ;;  %v775_v48 = vld [vmem:[%s1523_s6] ss:$0 sm:$0xff]  ;;  %s1326_s6 = scalar_lea.vmem %s762_s28, 128 }
  0xa6   :  { %1191 = vmatprep.subr.bf16.mxu0 %v1362_v50  ;;  %p1327_p4 = scmp.ne.s32.totalorder %s762_s28, %s1326_s6  ;;  %p1332_p6 = scmp.lt.s32.totalorder %s1326_s6, %s1326_s6 }
  0xa8   :  { %p1333_p7 = por %p1332_p6, %p1331_p5 }
  0xa9   :  { %1193 = vmatpush3.bf16.msra.mxu0 %v1168_v52 }
  0xaa   :  { %p1334_p8 = pnand %p1333_p7, %p1327_p4 }
 0x13f   :  { %v808_v53 = vpop.f32.mrb[0].mxu0 }
 0x140   :  { %v809_v55 = vpop.f32.mrb[1].mxu0 }
 0x141   :  { %v843_v56 = vpop.f32.mrb[0].mxu1  ;;  %v810_v57 = vadd.f32 %v809_v55, %v808_v53 }
 0x142   :  { %v844_v58 = vpop.f32.mrb[1].mxu1 }
 0x143   :  { %v845_v59 = vadd.f32 %v844_v58, %v843_v56  ;;  %v270_v61 = vadd.f32 %v810_v57, %v772_v54 }
 0x145   :  { %v340_v62 = vadd.f32 %v845_v59, %v270_v61  ;;  %v479_v63 = vpop.f32.mrb[2].mxu1 }
 0x146   :  { %v941_v0 = vpop.f32.mrb[3].mxu1 }
 0x15f   :  { %v878_v1 = vpop.f32.mrb[2].mxu0 }
 0x160   :  { %v879_v2 = vpop.f32.mrb[3].mxu0 }
 0x161   :  { %v880_v3 = vadd.f32 %v879_v2, %v878_v1 }
 0x163   :  { %v410_v4 = vadd.f32 %v880_v3, %v340_v62 }
 0x165   :  { %v480_v5 = vadd.f32 %v479_v63, %v410_v4 }
 0x167   :  { %v483_v6 = vmul.f32 0.5, %v480_v5 }
 0x169   :  { %1228 = vtanh.f32 %v483_v6 }
 0x173   :  { %v1229_v7 = vpop.eup %1228 }
 0x174   :  { %v485_v8 = vmul.f32 0.5, %v1229_v7 }
 0x176   :  { %v486_v9 = vadd.f32 0.5, %v485_v8 }
 0x178   :  { %975 = vmatmul.mubr.f32.vlgmr.msra.gmra.mrb[4].mxu1 %v486_v9 }
 0x179   :  { %1044 = vmatprep.mubr.msk.f32.mxu1 %vm1363_vm0, %v1364_v60  ;;  %1196 = vmatpush3.bf16.msra.mxu1 %v1195_v13  ;;  %v773_v60 = vld [vmem:[%s1521_s4] ss:$0 sm:$0xff] }
 0x17a   :  { %1197 = vmatprep.subr.bf16.mxu1 %v1362_v50 }
 0x17d   :  { %1199 = vmatpush3.bf16.msra.mxu1 %v1198_v15 }
 0x17e   :  { %1200 = vmatprep.subr.bf16.mxu1 %v1362_v50 }
 0x181   :  { %1202 = vmatpush3.bf16.msra.mxu1 %v1201_v18 }
 0x182   :  { %1203 = vmatprep.subr.bf16.mxu1 %v1362_v50 }
 0x185   :  { %1205 = vmatpush3.bf16.msra.mxu1 %v1204_v28 }
 0x186   :  { %1206 = vmatprep.subr.bf16.mxu1 %v1362_v50 }
 0x189   :  { %1208 = vmatpush3.bf16.msra.mxu1 %v1207_v31 }
 0x18a   :  { %1209 = vmatprep.subr.bf16.mxu1 %v1362_v50 }
 0x18d   :  { %1211 = vmatpush3.bf16.msra.mxu1 %v1210_v34 }
 0x18e   :  { %1212 = vmatprep.subr.bf16.mxu1 %v1362_v50 }
 0x191   :  { %1214 = vmatpush3.bf16.msra.mxu1 %v1213_v37 }
 0x192   :  { %1215 = vmatprep.subr.bf16.mxu1 %v1362_v50 }
 0x195   :  { %1217 = vmatpush3.bf16.msra.mxu1 %v1216_v40 }
 0x24b   :  { %v569_v19 = vpop.f32.mrb[4].mxu1 }
 0x24c   :  { %v570_v20 = vadd.f32 %v773_v60, %v569_v19  ;;  %v976_v21 = vpop.f32.mrb[5].mxu1 }
 0x24e   :  { %v573_v22 = vmul.f32 0.5, %v570_v20 }
 0x250   :  { %1230 = vtanh.f32 %v573_v22 }
 0x25a   :  { %v1231_v23 = vpop.eup %1230 }
 0x25b   :  { %v575_v24 = vmul.f32 0.5, %v1231_v23 }
 0x25d   :  { %v576_v25 = vadd.f32 0.5, %v575_v24 }
 0x25f   :  { %1010 = vmatmul.mubr.f32.vlgmr.msra.gmra.mrb[4].mxu0 %v576_v25 }
 0x332   :  { %v643_v41 = vpop.f32.mrb[4].mxu0 }
 0x333   :  { %v644_v42 = vadd.f32 %v773_v60, %v643_v41  ;;  %v1011_v43 = vpop.f32.mrb[5].mxu0 }
 0x335   :  { %v647_v44 = vmul.f32 0.5, %v644_v42 }
 0x337   :  { %1232 = vtanh.f32 %v647_v44 }
 0x341   :  { %v1233_v45 = vpop.eup %1232 }
 0x342   :  { %v649_v46 = vmul.f32 0.5, %v1233_v45 }
 0x344   :  { %v650_v47 = vadd.f32 0.5, %v649_v46 }
 0x346   :  { %1045 = vmatmul.mubr.f32.vlgmr.msra.gmra.mrb[6].mxu1 %v650_v47 }
 0x419   :  { %v740_v49 = vpop.f32.mrb[6].mxu1 }
 0x41a   :  { %v741_v51 = vadd.f32 %v775_v48, %v740_v49  ;;  %v1046_v50 = vpop.f32.mrb[7].mxu1 }
 0x41c   :  { %744 = vmax.xlane.f32.xlu0 %v741_v51 }
 0x4a9   :  { %v745_v52 = vpop.xlane.xlu0 %744 }
 0x4aa   :  { %v746_v53 = vsub.f32 %v741_v51, %v745_v52 }
 0x4ac   :  { %v747_v54 = vmul.f32 1.442695, %v746_v53 }
 0x4ae   :  { %1234 = vpow2.f32 %v747_v54 }
 0x4b8   :  { %v1235_v55 = vpop.eup %1234 }
 0x4b9   :  { %749 = vadd.xlane.f32.xlu0 %v1235_v55 }
 0x546   :  { %v750_v56 = vpop.xlane.xlu0 %749 }
 0x547   :  { %1236 = vlog2.f32 %v750_v56 }
 0x551   :  { %v1237_v57 = vpop.eup %1236 }
 0x552   :  { %v752_v58 = vmul.f32 0.6931472, %v1237_v57 }
 0x554   :  { %v753_v59 = vsub.f32 %v746_v53, %v752_v58 }
 0x556   :  { %754 = vst [vmem:[#allocation10] sm:$0xff] %v753_v59 }
 0x557   :  { %1337 = shalt.err (!%p1334_p8)
}
 0x558   :  { %s1338_s8 = scalar_lea.hbm %s1524_s7, 128 }
 0x559   :  { %p1339_p9 = scmp.ne.s32.totalorder %s1524_s7, %s1338_s8  ;;  %p1342_p10 = scmp.lt.u32.totalorder %s1338_s8, %s1524_s7 }
 0x55b   :  { %p1344_p11 = pnand %p1342_p10, %p1339_p9 }
 0x55d   :  { %1347 = shalt.err (!%p1344_p11)
}
 0x55e   :  { %764 = dma.vmem_to_hbm [thread:$0]  %s762_s28, 128, %s1524_s7, [#allocation4]  }
 0x55f   :  { %1354 = dma.done.wait [#allocation4], 128  }
 0x560   :  { %1355 = vsyncadd [#allocation4], 4294967168 }
 0x561   :  { %768 = vsyncpa [#allocation3], 1 }
 0x562   :  { %769 = vsyncpa [#allocation6], 1 }
 0x563   :  { %770 = vsyncpa [#allocation9], 1 }
 0x564   :  { %771 = vsyncpa [#allocation4], 1 }

</bundles_post_ra>
